<compile_context>
chip_gen: v6e
topology: v6e:2x2x1
jax: 0.10.0
libtpu: 0.0.40
codegen_flags: <defaults>
</compile_context>

<pallas_src>
import math
import functools

import jax
import jax.numpy as jnp
from jax.experimental import pallas as pl
from jax.experimental.pallas import tpu as pltpu


# ----------------------------------------------------------------------------
# Parameter / buffer setup (glue, plain JAX)
# ----------------------------------------------------------------------------
def make_positional_encoding_table(max_len: int, d_model: int) -> jnp.ndarray:
    """(max_len, d_model) sinusoidal table, identical to the torch buffer."""
    position = jnp.arange(0, max_len, dtype=jnp.float32)[:, None]            # (L, 1)
    div_term = jnp.exp(
        jnp.arange(0, d_model, 2, dtype=jnp.float32) * (-math.log(10000.0) / d_model)
    )                                                                         # (D/2,)
    pe = jnp.zeros((max_len, d_model), dtype=jnp.float32)
    pe = pe.at[:, 0::2].set(jnp.sin(position * div_term))
    pe = pe.at[:, 1::2].set(jnp.cos(position * div_term))
    return pe


def make_embedding_1d(key, num_embeddings: int, d_model: int) -> jnp.ndarray:
    """self.embedding_1D from __init__ — unused in forward, kept for parity."""
    return jax.random.normal(key, (num_embeddings, d_model), dtype=jnp.float32)


# ----------------------------------------------------------------------------
# Pallas kernels
# ----------------------------------------------------------------------------
def _pe_add_kernel(x_ref, pe_ref, o_ref, *, batch: int):
    # x_ref/o_ref: (TS, B*D) VMEM; pe_ref: (TS, D) VMEM
    pe_row = pe_ref[...]
    pe_b = jnp.concatenate([pe_row] * batch, axis=-1).astype(x_ref.dtype)  # (TS, B*D)
    o_ref[...] = x_ref[...] + pe_b


def _pe_add_dropout_kernel(x_ref, pe_ref, bits_ref, o_ref, *,
                           batch: int, threshold: int, scale: float):
    # Inverted dropout: keep with prob (1-p) and scale by 1/(1-p), like torch.
    pe_row = pe_ref[...]
    pe_b = jnp.concatenate([pe_row] * batch, axis=-1).astype(x_ref.dtype)
    val = x_ref[...] + pe_b
    keep = bits_ref[...] >= jnp.int32(threshold)        # integer threshold compare
    o_ref[...] = jnp.where(keep, val * jnp.asarray(scale, dtype=val.dtype),
                           jnp.zeros_like(val))


# ----------------------------------------------------------------------------
# Wrapper
# ----------------------------------------------------------------------------
def _choose_row_tile(seq_len: int, row_bytes: int, target_bytes: int = 1 << 20) -> int:
    """~1 MiB row blocks, rows a multiple of 8 (or the full S if smaller)."""
    ts = max(8, (target_bytes // max(row_bytes, 1)) // 8 * 8)
    return min(ts, seq_len)


def positional_encoding_forward(x, pe_table, *, p: float = 0.1,
                                training: bool = False, rng_key=None):
    """x: (S, B, D). Returns dropout(x + pe[:S]) with PyTorch semantics."""
    S, B, D = x.shape
    if S > pe_table.shape[0]:
        raise ValueError("sequence length exceeds max_len of the pe table")

    pe_slice = pe_table[:S, :].astype(x.dtype)            # (S, D), small
    x2 = x.reshape(S, B * D)                               # lane-dense last dim

    ts = _choose_row_tile(S, B * D * x2.dtype.itemsize)
    grid = (pl.cdiv(S, ts),)
    x_spec = pl.BlockSpec((ts, B * D), lambda i: (i, 0))
    pe_spec = pl.BlockSpec((ts, D), lambda i: (i, 0))
    bits_spec = pl.BlockSpec((ts, B * D), lambda i: (i, 0))
    out_spec = pl.BlockSpec((ts, B * D), lambda i: (i, 0))

    compiler_params = pltpu.CompilerParams(
        dimension_semantics=("parallel",),                 # megacore-shardable
        vmem_limit_bytes=32 * 1024 * 1024,                 # safe on v5e/v6e/v7x
    )
    out_shape = jax.ShapeDtypeStruct((S, B * D), x.dtype)

    use_dropout = training and p > 0.0
    if not use_dropout:
        out2 = pl.pallas_call(
            functools.partial(_pe_add_kernel, batch=B),
            out_shape=out_shape,
            grid=grid,
            in_specs=[x_spec, pe_spec],
            out_specs=out_spec,
            input_output_aliases={0: 0},                   # write output in place of x
            compiler_params=compiler_params,
        )(x2, pe_slice)
    else:
        if not (0.0 < p < 1.0):
            raise ValueError("dropout p must be in [0, 1) for the training path")
        if rng_key is None:
            rng_key = jax.random.PRNGKey(0)
        # Uniform 32-bit randoms; flip the sign bit so a *signed* compare inside
        # the kernel preserves the unsigned ordering. keep  <=>  u32 >= p * 2^32.
        bits_u32 = jax.random.bits(rng_key, (S, B * D), dtype=jnp.uint32)
        bits_i32 = jax.lax.bitcast_convert_type(
            bits_u32 ^ jnp.uint32(0x80000000), jnp.int32)
        threshold = int(round(p * 4294967296.0)) - 2147483648
        out2 = pl.pallas_call(
            functools.partial(_pe_add_dropout_kernel, batch=B,
                              threshold=threshold, scale=1.0 / (1.0 - p)),
            out_shape=out_shape,
            grid=grid,
            in_specs=[x_spec, pe_spec, bits_spec],
            out_specs=out_spec,
            input_output_aliases={0: 0},
            compiler_params=compiler_params,
        )(x2, pe_slice, bits_i32)

    return out2.reshape(S, B, D)


# ----------------------------------------------------------------------------
# Demo / self-check
# ----------------------------------------------------------------------------
if __name__ == "__main__":
    key = jax.random.PRNGKey(0)
    k_x, k_emb, k_drop = jax.random.split(key, 3)

    S, B, D = 8, 2, 32          # seq_len, batch, d_model
    MAX_LEN = 64
    P_DROP = 0.1

    x = jax.random.normal(k_x, (S, B, D), dtype=jnp.float32)
    pe_table = make_positional_encoding_table(MAX_LEN, D)
    _embedding_1d = make_embedding_1d(k_emb, 52, D)   # declared in __init__, unused in forward

    # Eval mode (dropout = identity): exact check against plain-JAX reference.
    out = jax.block_until_ready(
        positional_encoding_forward(x, pe_table, p=P_DROP, training=False))
    ref = x + pe_table[:S][:, None, :]
    assert out.shape == (S, B, D)
    assert jnp.allclose(out, ref, atol=1e-6), "eval-mode mismatch vs. reference"

    # Training mode: every element must be either dropped (0) or ref / (1 - p).
    out_train = jax.block_until_ready(
        positional_encoding_forward(x, pe_table, p=P_DROP, training=True, rng_key=k_drop))
    assert out_train.shape == (S, B, D)
    scaled = ref / (1.0 - P_DROP)
    elem_ok = jnp.isclose(out_train, 0.0, atol=1e-6) | jnp.isclose(
        out_train, scaled, rtol=1e-5, atol=1e-6)
    assert bool(jnp.all(elem_ok)), "training-mode dropout values not in {0, ref/(1-p)}"

    print("KERNEL_OK")
</pallas_src>

<mosaic_0001>
module attributes {stable_mosaic.version = 11 : i64} {
  func.func @_pe_add_kernel(%arg0: i32, %arg1: memref<8x64xf32, #tpu.memory_space<vmem>>, %arg2: memref<8x32xf32, #tpu.memory_space<vmem>>, %arg3: memref<8x64xf32, #tpu.memory_space<vmem>>) attributes {dimension_semantics = [#tpu.dimension_semantics<parallel>], iteration_bounds = array<i64: 1>, scalar_prefetch = 0 : i64, scratch_operands = 0 : i64, tpu.core_type = #tpu.core_type<tc>, window_params = [{transform_indices = @transform_0, window_bounds = array<i64: 8, 64>}, {transform_indices = @transform_1, window_bounds = array<i64: 8, 32>}, {transform_indices = @transform_2, window_bounds = array<i64: 8, 64>}]} {
    %c0 = arith.constant 0 : index
    %c0_0 = arith.constant 0 : index
    %0 = vector.load %arg2[%c0, %c0_0] : memref<8x32xf32, #tpu.memory_space<vmem>>, vector<8x32xf32>
    %1 = tpu.concatenate %0, %0 in 1 : vector<8x32xf32>, vector<8x32xf32> -> vector<8x64xf32>
    %c0_1 = arith.constant 0 : index
    %c0_2 = arith.constant 0 : index
    %2 = vector.load %arg1[%c0_1, %c0_2] : memref<8x64xf32, #tpu.memory_space<vmem>>, vector<8x64xf32>
    %3 = arith.addf %2, %1 : vector<8x64xf32>
    %c0_3 = arith.constant 0 : index
    %c0_4 = arith.constant 0 : index
    %4 = vector.load %arg3[%c0_3, %c0_4] : memref<8x64xf32, #tpu.memory_space<vmem>>, vector<8x64xf32>
    tpu.vector_store %arg3[%c0_3, %c0_4], %3 {strides = array<i32>} : memref<8x64xf32, #tpu.memory_space<vmem>>, vector<8x64xf32>,
    return
  }
  func.func @transform_0(%arg0: i32) -> (i32, i32) {
    %c0_i32 = arith.constant 0 : i32
    %c0_i32_0 = arith.constant 0 : i32
    return %arg0, %c0_i32 : i32, i32
  }
  func.func @transform_1(%arg0: i32) -> (i32, i32) {
    %c0_i32 = arith.constant 0 : i32
    %c0_i32_0 = arith.constant 0 : i32
    return %arg0, %c0_i32 : i32, i32
  }
  func.func @transform_2(%arg0: i32) -> (i32, i32) {
    %c0_i32 = arith.constant 0 : i32
    %c0_i32_0 = arith.constant 0 : i32
    return %arg0, %c0_i32 : i32, i32
  }
}

</mosaic_0001>

<bundles_post_ra>
// kernel: tpu_custom_call.1
= control target key start
LH: loop header
LB: loop body
LE: loop exit
PB: predicated region body
PF: predicated region fallthrough
CT: control target
= control target key end

     0   :  { %7 = vsyncpa [#allocation3], 0  ;;  %s124_s0 = inlined_call_operand.hbm [shape: f32[8,64], index: 0, kind: input, shape index: {}, may-alias: {0,2}]   ;;  %s125_s1 = inlined_call_operand.vmem [shape: f32[8,32], index: 1, kind: input, shape index: {}]   ;;  %s126_s2 = inlined_call_operand.hbm [shape: f32[8,64], index: 2, kind: output, shape index: {}, may-alias: {0,2}]  }
   0x1   :  { %8 = vsyncpa [#allocation4], 0  ;;  %s97_s9 = smov [#allocation2]  }
   0x2   :  { %s15_s10 = sshll.u32 %s97_s9, 4  ;;  %s16_s10 = int_to_ptr.vmem [resolvable:$true] %s15_s10 }
   0x3   :  { %s61_s11 = scalar_lea.vmem %s16_s10, 128  ;;  %p66_p1 = scmp.lt.s32.totalorder %s16_s10, %s16_s10 }
   0x4   :  { %p62_p0 = scmp.ne.s32.totalorder %s16_s10, %s61_s11  ;;  %p67_p2 = scmp.lt.s32.totalorder %s61_s11, %s61_s11 }
   0x6   :  { %p68_p3 = por %p67_p2, %p66_p1 }
   0x8   :  { %p69_p4 = pnand %p68_p3, %p62_p0 }
   0xa   :  { %72 = shalt.err (!%p69_p4)
}
   0xb   :  { %18 = dma.hbm_to_vmem [thread:$0]  %s124_s0, 128, %s16_s10, [#allocation3]  }
   0xc   :  { %93 = dma.done.wait [#allocation3], 128  }
   0xd   :  { %94 = vsyncadd [#allocation3], 4294967168  ;;  %v24_v0 = vld [vmem:[%s125_s1] sm:$0xff]  ;;  %s98_s16 = smov 32   ;;  %vm29_vm0 = vcmask 261120   ;;  %s99_s17 = smov [#allocation5]  }
   0xe   :  { %26 = vrot.lane.b32.xlu0 %v24_v0, %s98_s16  ;;  %v31_v1 = vld [vmem:[#allocation2] sm:$0xff]  ;;  %s41_s18 = sshll.u32 %s99_s17, 4  ;;  %vm33_vm1 = vcmask 523264   ;;  %s42_s18 = int_to_ptr.vmem [resolvable:$true] %s41_s18 }
   0xf   :  { %s73_s19 = scalar_lea.vmem %s42_s18, 128  ;;  %p78_p6 = scmp.lt.s32.totalorder %s42_s18, %s42_s18 }
  0x10   :  { %p74_p5 = scmp.ne.s32.totalorder %s42_s18, %s73_s19  ;;  %p79_p7 = scmp.lt.s32.totalorder %s73_s19, %s73_s19 }
  0x12   :  { %p80_p8 = por %p79_p7, %p78_p6 }
  0x14   :  { %p81_p9 = pnand %p80_p8, %p74_p5 }
  0x80   :  { %v27_v2 = vpop.permute.xlu0 %26 }
  0x81   :  { %v30_v3 = vsel %vm29_vm0, %v24_v0, %v27_v2 }
  0x82   :  { %v32_v4 = vadd.f32 %v31_v1, %v30_v3 }
  0x84   :  { %34 = vst.msk [vmem:[#allocation5] sm:$0xff] %vm33_vm1, %v32_v4 }
  0x85   :  { %84 = shalt.err (!%p81_p9)
}
  0x86   :  { %44 = dma.vmem_to_hbm [thread:$0]  %s42_s18, 128, %s126_s2, [#allocation4]  }
  0x87   :  { %95 = dma.done.wait [#allocation4], 128  }
  0x88   :  { %96 = vsyncadd [#allocation4], 4294967168 }
  0x89   :  { %48 = vsyncpa [#allocation3], 1 }
  0x8a   :  { %49 = vsyncpa [#allocation4], 1 }

</bundles_post_ra>
